<compile_context>
chip_gen: v5e
topology: v5e:2x2
jax: 0.10.0
libtpu: 0.0.40
codegen_flags: <defaults>
</compile_context>

<pallas_src>
import functools

import jax
import jax.numpy as jnp
from jax.experimental import pallas as pl
from jax.experimental.pallas import tpu as pltpu


def _attn_pool_kernel(x_ref, wt_ref, o_ref, *, precision):
    # x_ref : (S, TN, D) residual tile   (S = num_streams)
    # wt_ref: (D, D) linear weight, pre-transposed to (in, out)
    # o_ref : (TN, D) pooled output tile
    x = x_ref[...]
    s, tn, d = x.shape

    # logits = x @ W^T (weight already transposed on host) -- MXU matmul with
    # f32 accumulation.  Collapsing the leading dims (s, tn, d) -> (s*tn, d)
    # keeps the lane axis (d) untouched; tn is a multiple of 8 (or the full
    # row count), so the sublane merge is layout-preserving.
    logits = jnp.dot(
        x.reshape(s * tn, d), wt_ref[...],
        preferred_element_type=jnp.float32,
        precision=precision,
    ).reshape(s, tn, d)

    # Numerically-stable softmax over the stream axis (axis 0 == torch dim=-2),
    # with the normalization fused into the output.
    m = jnp.max(logits, axis=0, keepdims=True)          # (1, TN, D)
    p = jnp.exp(logits - m)                             # (S, TN, D) f32
    denom = jnp.sum(p, axis=0)                          # (TN, D)   f32
    acc = jnp.sum(x.astype(jnp.float32) * p, axis=0)    # (TN, D)   f32

    # Exact divide (tiny: 1/S of the tile) -- approx reciprocal was the source
    # of the correctness failure.
    o_ref[...] = (acc / denom).astype(o_ref.dtype)


def _choose_row_tile(n, s, d, in_bytes, out_bytes, *, tn_max=512,
                     vmem_budget_bytes=24 * 1024 * 1024):
    """Largest n-row tile (multiple of 8, or the full n) keeping double-buffered
    input/output tiles plus f32 temporaries inside a VMEM budget that is safe on
    every TPU generation (incl. v7x's 64 MiB physical VMEM)."""
    # per n-row: 2x-buffered x tile + f32 logits/p temporaries + out/acc/denom
    per_row = s * d * (2 * in_bytes + 8) + d * (12 + 2 * out_bytes)
    tn = max(8, min(tn_max, int(vmem_budget_bytes // max(per_row, 1))))
    tn = (tn // 8) * 8
    if n <= tn:
        return n            # block == full array dim: always a legal block
    return tn               # multiple of 8; n is padded up to a multiple of tn


def attention_pool_reduce_stream(residuals, weight, num_streams):
    """residuals: (b*num_streams, n, d), feature-last (channel_first=False).
    weight: (d, d) nn.Linear weight in (out, in) orientation.
    Returns (b, n, d)."""
    bs, n, d = residuals.shape
    s = num_streams
    assert bs % s == 0
    b = bs // s

    # '(b s) n d -> b s n d' : free reshape (just splits the leading dim),
    # no HBM transpose pass.
    x = residuals.reshape(b, s, n, d)

    # Pre-transpose the weight once to (in, out) and match the MXU input dtype
    # so the kernel does no per-iteration transpose / cast.
    w_t = jnp.asarray(weight).T.astype(residuals.dtype)

    out_dtype = residuals.dtype
    in_bytes = jnp.dtype(residuals.dtype).itemsize
    out_bytes = jnp.dtype(out_dtype).itemsize

    # f32 inputs: force full-precision MXU passes so results track an f32
    # reference; bf16/f8 inputs: native single-pass MXU.
    precision = (jax.lax.Precision.HIGHEST
                 if jnp.dtype(residuals.dtype) == jnp.float32
                 else jax.lax.Precision.DEFAULT)

    tn = _choose_row_tile(n, s, d, in_bytes, out_bytes)
    n_pad = ((n + tn - 1) // tn) * tn
    if n_pad != n:
        # Ragged last tile: rows are independent, so zero-pad and slice off.
        x = jnp.pad(x, ((0, 0), (0, 0), (0, n_pad - n), (0, 0)))

    grid = (b, n_pad // tn)

    cost = pl.CostEstimate(
        flops=2 * b * s * n_pad * d * d + 5 * b * s * n_pad * d,
        transcendentals=b * s * n_pad * d,
        bytes_accessed=(b * s * n_pad * d * in_bytes
                        + d * d * in_bytes
                        + b * n_pad * d * out_bytes),
    )

    kernel = functools.partial(_attn_pool_kernel, precision=precision)

    out = pl.pallas_call(
        kernel,
        out_shape=jax.ShapeDtypeStruct((b, n_pad, d), out_dtype),
        grid_spec=pltpu.PrefetchScalarGridSpec(
            num_scalar_prefetch=0,
            grid=grid,
            in_specs=[
                # (1, s, tn, d) block, batch dim squeezed from the kernel view.
                pl.BlockSpec((None, s, tn, d), lambda ib, it: (ib, 0, it, 0)),
                # Constant weight block: same index every step => no re-fetch.
                pl.BlockSpec((d, d), lambda ib, it: (0, 0)),
            ],
            out_specs=pl.BlockSpec((None, tn, d), lambda ib, it: (ib, it, 0)),
        ),
        compiler_params=pltpu.CompilerParams(
            dimension_semantics=("parallel", "parallel"),
            vmem_limit_bytes=48 * 1024 * 1024,
        ),
        cost_estimate=cost,
    )(x, w_t)

    if n_pad != n:
        out = out[:, :n, :]
    return out
    # TODO(synk): channel_first=True layout ('(b s) d ... -> b ... s d') is not
    # implemented; callers should pre-permute to feature-last.


def _reference(residuals, weight, num_streams):
    bs, n, d = residuals.shape
    b = bs // num_streams
    x = residuals.reshape(b, num_streams, n, d).transpose(0, 2, 1, 3)  # b n s d
    logits = jnp.einsum('bnsd,ed->bnse', x, weight,
                        precision=jax.lax.Precision.HIGHEST)           # x @ W^T
    attn = jax.nn.softmax(logits, axis=-2)
    return jnp.sum(x * attn, axis=-2)                                  # b n d


if __name__ == "__main__":
    b, num_streams, n, d = 2, 4, 16, 32

    key = jax.random.PRNGKey(0)
    k_w, k_x = jax.random.split(key)

    # The module initializes the weight to eye(dim); perturb it slightly so the
    # MXU matmul path (general trained weight) is actually exercised.
    weight = jnp.eye(d, dtype=jnp.float32) \
        + 0.02 * jax.random.normal(k_w, (d, d), dtype=jnp.float32)
    residuals = jax.random.normal(k_x, (b * num_streams, n, d), dtype=jnp.float32)

    out = attention_pool_reduce_stream(residuals, weight, num_streams)
    out = jax.block_until_ready(out)

    ref = _reference(residuals, weight, num_streams)
    assert out.shape == (b, n, d)
    assert jnp.allclose(out, ref, rtol=2e-3, atol=2e-3), "mismatch vs reference"

    print("KERNEL_OK")
</pallas_src>

<mosaic_0001>
module attributes {stable_mosaic.version = 11 : i64} {
  func.func @_attn_pool_kernel(%arg0: i32, %arg1: i32, %arg2: memref<1x4x16x32xf32, #tpu.memory_space<vmem>>, %arg3: memref<32x32xf32, #tpu.memory_space<vmem>>, %arg4: memref<1x16x32xf32, #tpu.memory_space<vmem>>) attributes {dimension_semantics = [#tpu.dimension_semantics<parallel>, #tpu.dimension_semantics<parallel>], iteration_bounds = array<i64: 2, 1>, scalar_prefetch = 0 : i64, scratch_operands = 0 : i64, tpu.core_type = #tpu.core_type<tc>, window_params = [{transform_indices = @transform_0, window_bounds = array<i64: 1, 4, 16, 32>}, {pipeline_mode = #tpu.pipeline_mode<synchronous>, transform_indices = @transform_1, window_bounds = array<i64: 32, 32>}, {transform_indices = @transform_2, window_bounds = array<i64: 1, 16, 32>}]} {
    %c0 = arith.constant 0 : index
    %c0_0 = arith.constant 0 : index
    %c0_1 = arith.constant 0 : index
    %c0_2 = arith.constant 0 : index
    %0 = vector.load %arg2[%c0, %c0_0, %c0_1, %c0_2] : memref<1x4x16x32xf32, #tpu.memory_space<vmem>>, vector<1x4x16x32xf32>
    %1 = vector.shape_cast %0 : vector<1x4x16x32xf32> to vector<4x16x32xf32>
    %2 = vector.shape_cast %1 : vector<4x16x32xf32> to vector<64x32xf32>
    %c0_3 = arith.constant 0 : index
    %c0_4 = arith.constant 0 : index
    %3 = vector.load %arg3[%c0_3, %c0_4] : memref<32x32xf32, #tpu.memory_space<vmem>>, vector<32x32xf32>
    %cst = arith.constant dense<0.000000e+00> : vector<64x32xf32>
    %4 = tpu.matmul %2, %3, %cst {dimension_numbers = #tpu.dot_dimension_numbers<[1], [0], [0], [1], [0, 0, 1, 1], [], []>, precision = #tpu.contract_precision<fp32>} : vector<64x32xf32>, vector<32x32xf32>, vector<64x32xf32> -> vector<64x32xf32>
    %5 = vector.shape_cast %4 : vector<64x32xf32> to vector<4x16x32xf32>
    %cst_5 = arith.constant dense<0xFF800000> : vector<16x32xf32>
    %6 = vector.multi_reduction <maximumf>, %5, %cst_5 [0] : vector<4x16x32xf32> to vector<16x32xf32>
    %7 = vector.shape_cast %6 : vector<16x32xf32> to vector<1x16x32xf32>
    %8 = vector.broadcast %7 : vector<1x16x32xf32> to vector<4x16x32xf32>
    %9 = arith.subf %5, %8 : vector<4x16x32xf32>
    %10 = math.exp %9 : vector<4x16x32xf32>
    %cst_6 = arith.constant dense<0.000000e+00> : vector<16x32xf32>
    %11 = vector.multi_reduction <add>, %10, %cst_6 [0] : vector<4x16x32xf32> to vector<16x32xf32>
    %12 = arith.mulf %1, %10 : vector<4x16x32xf32>
    %cst_7 = arith.constant dense<0.000000e+00> : vector<16x32xf32>
    %13 = vector.multi_reduction <add>, %12, %cst_7 [0] : vector<4x16x32xf32> to vector<16x32xf32>
    %14 = arith.divf %13, %11 : vector<16x32xf32>
    %c0_8 = arith.constant 0 : index
    %c0_9 = arith.constant 0 : index
    %c0_10 = arith.constant 0 : index
    %15 = vector.load %arg4[%c0_8, %c0_9, %c0_10] : memref<1x16x32xf32, #tpu.memory_space<vmem>>, vector<1x16x32xf32>
    %16 = vector.shape_cast %15 : vector<1x16x32xf32> to vector<16x32xf32>
    %17 = vector.shape_cast %14 : vector<16x32xf32> to vector<1x16x32xf32>
    tpu.vector_store %arg4[%c0_8, %c0_9, %c0_10], %17 {strides = array<i32>} : memref<1x16x32xf32, #tpu.memory_space<vmem>>, vector<1x16x32xf32>,
    return
  }
  func.func @transform_0(%arg0: i32, %arg1: i32) -> (i32, i32, i32, i32) {
    %c0_i32 = arith.constant 0 : i32
    %c0_i32_0 = arith.constant 0 : i32
    %c0_i32_1 = arith.constant 0 : i32
    return %arg0, %c0_i32, %arg1, %c0_i32_0 : i32, i32, i32, i32
  }
  func.func @transform_1(%arg0: i32, %arg1: i32) -> (i32, i32) {
    %c0_i32 = arith.constant 0 : i32
    %c0_i32_0 = arith.constant 0 : i32
    %c0_i32_1 = arith.constant 0 : i32
    return %c0_i32, %c0_i32_0 : i32, i32
  }
  func.func @transform_2(%arg0: i32, %arg1: i32) -> (i32, i32, i32) {
    %c0_i32 = arith.constant 0 : i32
    %c0_i32_0 = arith.constant 0 : i32
    return %arg0, %arg1, %c0_i32 : i32, i32, i32
  }
}

</mosaic_0001>

<bundles_post_ra>
// kernel: tpu_custom_call.1
= control target key start
LH: loop header
LB: loop body
LE: loop exit
PB: predicated region body
PF: predicated region fallthrough
CT: control target
= control target key end

     0   :  { %7 = vsyncpa [#allocation3], 0  ;;  %s1506_s0 = inlined_call_operand.hbm [shape: f32[2,4,16,32], index: 0, kind: input, shape index: {}]   ;;  %s1507_s1 = inlined_call_operand.hbm [shape: f32[32,32], index: 1, kind: input, shape index: {}]   ;;  %s1508_s2 = inlined_call_operand.hbm [shape: f32[2,16,32], index: 2, kind: output, shape index: {}]  }
   0x1   :  { %9 = vsyncpa [#allocation3 + $0x1], 0 }
   0x2   :  { %10 = vsyncpa [#allocation6], 0 }
   0x3   :  { %11 = vsyncpa [#allocation4], 0 }
   0x4   :  { %13 = vsyncpa [#allocation4 + $0x1], 0  ;;  %s1153_s9 = smov 0   ;;  %s1155_s10 = smov 0  }
   0x5   :  { %s1157_s11 = smov 0   ;;  %s1159_s12 = smov 0  }
   0x6   :  { %s1161_s13 = smov 0   ;;  %s1163_s14 = smov 0  }
   0x7 LB: > { %s861_s15 = sadd.s32 4294967295, %s1131_s14   ;;  %s862_s16 = sadd.s32 4294967294, %s1131_s14   ;;  %s1131_s14 = sphi %s1163_s14, %s19_s14   ;;  %s1127_s13 = sphi %s1161_s13, %s1520_s13   ;;  %s1123_s12 = sphi %s1159_s12, %s1519_s12   ;;  %s1119_s11 = sphi %s1157_s11, %s1518_s11   ;;  %s1115_s10 = sphi %s1155_s10, %s1517_s10   ;;  %s1111_s9 = sphi %s1153_s9, %s1516_s9  }
   0x8   : > { %p53_p0 = scmp.ne.s32.totalorder %s1115_s10, %s1111_s9  ;;  %p1187_p1 = scmp.eq.s32.totalorder %s861_s15, 0 }
   0x9   : > { %p1191_p2 = scmp.eq.s32.totalorder %s861_s15, 1  ;;  %p106_p3 = scmp.eq.s32.totalorder %s862_s16, 1 }
   0xa   : > { %p1197_p4 = por %p1187_p1, %p53_p0  ;;  %p863_p5 = scmp.ge.s32.totalorder %s1131_s14, 1 }
   0xb   : > { %p1202_p6 = por %p106_p3, %p53_p0  ;;  %p113_p7 = scmp.lt.s32.totalorder %s1131_s14, 3 }
   0xc   : > { %s124_s23 = sshll.u32 %s1507_s1, 4  ;;  %s1133_s25 = smov [#allocation5]   ;;  %s125_s23 = int_to_ptr.hbm [resolvable:$true] %s124_s23 }
   0xd   : > { %p1210_p8 = pnand %p863_p5, %p113_p7  ;;  %s126_s26 = sshll.u32 %s1133_s25, 4  ;;  %s127_s26 = int_to_ptr.vmem [resolvable:$true] %s126_s26 }
   0xe   : > { %p865_p11 = scmp.ge.s32.totalorder %s1131_s14, 2  ;;  %s1134_s27 = smov 128  }
   0xf   : > { %p896_p9 = pneg %p1210_p8  ;;  %s1135_s28 = smov 8  }
  0x10   : > { %s31_s29 = sadd.s32 1, %s1127_s13  ;;  %s40_s30 = sadd.s32 1, %s1119_s11 }
  0x11   : > { %p897_p10 = pnand %p896_p9, %p1187_p1  ;;  %p33_p12 = scmp.ge.s32.totalorder %s31_s29, 2 }
  0x12   : > { %p47_p13 = scmp.ne.s32.totalorder %s1119_s11, %s1115_s10  ;;  %p48_p0 = scmp.eq.s32.totalorder %s1131_s14, 0 }
  0x13   : > { %899 = dma.hbm_to_vmem [thread:$0]  (!%p897_p10), %s125_s23, 512, %s127_s26, [#allocation6], %s1134_s27, %s1134_s27, %s1135_s28  }
  0x14   : > { %s1522_s29 = smov (%p33_p12, %s31_s29), 0  ;;  %p1229_p3 = por %p48_p0, %p47_p13 }
  0x15   : > { %p1235_p5 = por %p1191_p2, %p47_p13  ;;  %s35_s5 = ssub.s32 %s1127_s13, %s1522_s29 }
  0x16   : > { %p909_p7 = scmp.lt.s32.totalorder %s1131_s14, 2  ;;  %p38_p9 = scmp.eq.s32.totalorder %s35_s5, 0 }
  0x17   : > { %s140_s6 = sand.u32 1, %s1119_s11   ;;  %s878_s15 = sshll.u32 %s1127_s13, 6 }
  0x18   : > { %s866_s7 = sshll.u32 %s140_s6, 6  ;;  %s151_s22 = scalar_lea.hbm %s1506_s0, %s878_s15 }
  0x19   : > { %s1244_s8 = scalar_select %p38_p9, %s1119_s11, %s40_s30  }
  0x1a   : > { %s144_s23 = scalar_lea.vmem [#allocation2], %s866_s7  ;;  %s152_s18 = sshll.u32 %s151_s22, 4  ;;  %s153_s18 = int_to_ptr.hbm [resolvable:$true] %s152_s18 }
  0x1b   : > { %s154_s25 = sshll.u32 %s144_s23, 4  ;;  %p901_p2 = pnand %p909_p7, %p1229_p3  ;;  %s155_s25 = int_to_ptr.vmem [resolvable:$true] %s154_s25 }
  0x1c   : > { %s141_s26 = scalar_lea.sflag [#allocation3], %s140_s6  ;;  %166 = sbr.rel (%p1210_p8) target bundleno = 329 (0x149), region = 28 }
  0x1d   : > { %903 = dma.hbm_to_vmem [thread:$0]  (!%p901_p2), %s153_s18, 1024, %s155_s25, %s141_s26, %s1134_s27, %s1134_s27, %s1135_s28  }
  0x1e   : > { %s1258_s30 = sand.u32 (!%p1210_p8), 1, %s1115_s10  }
  0x1f   : > { %s870_s5 = sshll.u32 (!%p1210_p8), %s1258_s30, 6  ;;  %s169_s7 = scalar_lea.sflag (!%p1210_p8), [#allocation3], %s1258_s30 }
  0x20   : > { %s1262_s15 = scalar_lea.vmem (!%p1210_p8), [#allocation2], %s870_s5 }
  0x21   : > { %1098 = dma.done.wait (%p1197_p4), %s169_s7, 1024  }
  0x22   : > { %1100 = vsyncadd (%p1197_p4), %s169_s7, 4294966272 }
  0x23   : > { %1102 = dma.done.wait (%p1187_p1), [#allocation6], 512  }
  0x24   : > { %1104 = vsyncadd (%p1187_p1), [#allocation6], 4294966784  ;;  %vm213_vm0 = vcmask 261120   ;;  %v212_v0 = vld [vmem:[#allocation5 + $0x18] sm:$0xff]  ;;  %v211_v1 = vld [vmem:[#allocation5 + $0x10] sm:$0xff]  ;;  %s872_s17 = sshll.u32 %s1258_s30, 4 }
  0x25   : > { %v210_v2 = vld [vmem:[#allocation5 + $0x8] sm:$0xff]  ;;  %v1272_v3 = vand.u32 4294901760, %v212_v0  ;;  %v1274_v4 = vand.u32 4294901760, %v211_v1  ;;  %v209_v6 = vld [vmem:[#allocation5] sm:$0xff]  ;;  %v1294_v13 = vld [vmem:[%s1262_s15 + $0x30] sm:$0xff]  ;;  %s879_s19 = sshll.u32 %s1123_s12, 4 }
  0x26   : > { %v1276_v5 = vand.u32 4294901760, %v210_v2  ;;  %v1279_v7 = vld [vmem:[%s1262_s15 + $0x20] sm:$0xff]  ;;  %v1282_v8 = vld [vmem:[%s1262_s15 + $0x28] sm:$0xff]  ;;  %v1284_v9 = vand.u32 4294901760, %v209_v6  ;;  %v233_v21 = vsel %vm213_vm0, %v1294_v13, 0  ;;  %v1338_v37 = vld [vmem:[%s1262_s15 + $0x10] sm:$0xff]  ;;  %s760_s3 = scalar_lea.hbm %s1508_s2, %s879_s19 }
  0x27   : > { %v227_v10 = vsel %vm213_vm0, %v1279_v7, 0  ;;  %v230_v11 = vsel %vm213_vm0, %v1282_v8, 0  ;;  %v1291_v12 = vld [vmem:[%s1262_s15] sm:$0xff]  ;;  %880 = vmatpush.msra.mxu2 %v1272_v3  ;;  %v336_v14 = vsub.f32 %v212_v0, %v1272_v3  ;;  %v342_v16 = vsub.f32 %v211_v1, %v1274_v4  ;;  %251 = vmatpush.msra.mxu0 %v1272_v3  ;;  %v1335_v36 = vld [vmem:[%s1262_s15 + $0x8] sm:$0xff]  ;;  %v1350_v46 = vld [vmem:[%s1262_s15 + $0x38] sm:$0xff]  ;;  %s198_s24 = scalar_lea.vmem [#allocation7], %s872_s17 }
  0x28   : > { %v1298_v15 = vand.u32 4294901760, %v227_v10  ;;  %v348_v17 = vsub.f32 %v210_v2, %v1276_v5  ;;  %v1304_v18 = vsub.f32 %v209_v6, %v1284_v9  ;;  %v1306_v19 = vand.u32 4294901760, %v230_v11  ;;  %v1371_v57 = vld [vmem:[%s1262_s15 + $0x18] sm:$0xff]  ;;  %s761_s6 = sshll.u32 %s198_s24, 4  ;;  %s763_s16 = sshll.u32 %s760_s3, 4  ;;  %s762_s6 = int_to_ptr.vmem [resolvable:$true] %s761_s6  ;;  %s764_s16 = int_to_ptr.hbm [resolvable:$true] %s763_s16 }
  0x29   : > { %v215_v20 = vsel %vm213_vm0, %v1291_v12, 0  ;;  %881 = vmatpush.msra.mxu2 %v1274_v4  ;;  %v337_v22 = vand.u32 4294901760, %v336_v14  ;;  %v343_v24 = vand.u32 4294901760, %v342_v16  ;;  %253 = vmatpush.msra.mxu0 %v1274_v4  ;;  %v1332_v35 = vand.u32 4294901760, %v233_v21  ;;  %s747_s12 = scalar_lea.sflag [#allocation4], %s1258_s30  ;;  %s1059_s21 = sshra.s32 %s764_s16, 4  ;;  %s1060_s21 = int_to_ptr.hbm [resolvable:$true] %s1059_s21 }
  0x2a   : > { %v1314_v23 = vsub.f32 %v227_v10, %v1298_v15  ;;  %v349_v25 = vand.u32 4294901760, %v348_v17  ;;  %v355_v26 = vand.u32 4294901760, %v1304_v18  ;;  %v1319_v27 = vsub.f32 %v230_v11, %v1306_v19  ;;  %s1061_s22 = scalar_lea.hbm %s1060_s21, 16  ;;  %s1065_s18 = scalar_lea.hbm %s1508_s2, 32 }
  0x2b   : > { %v1321_v28 = vand.u32 4294901760, %v215_v20  ;;  %882 = vmatpush.msra.mxu2 %v1276_v5  ;;  %v338_v29 = vsub.f32 %v336_v14, %v337_v22  ;;  %v344_v31 = vsub.f32 %v342_v16, %v343_v24  ;;  %255 = vmatpush.msra.mxu0 %v1276_v5  ;;  %v218_v45 = vsel %vm213_vm0, %v1335_v36, 0  ;;  %p1062_p1 = scmp.ne.s32.totalorder %s1060_s21, %s1061_s22  ;;  %p1066_p10 = scmp.lt.s32.totalorder %s1060_s21, %s1508_s2 }
  0x2c   : > { %v292_v30 = vand.u32 4294901760, %v1314_v23  ;;  %v350_v32 = vsub.f32 %v348_v17, %v349_v25  ;;  %v356_v33 = vsub.f32 %v1304_v18, %v355_v26  ;;  %v300_v41 = vand.u32 4294901760, %v1319_v27  ;;  %p1067_p12 = scmp.lt.s32.totalorder %s1065_s18, %s1061_s22 }
  0x2d   : > { %v1330_v34 = vsub.f32 %v215_v20, %v1321_v28  ;;  %883 = vmatpush.msra.mxu2 %v1284_v9  ;;  %v339_v38 = vand.u32 4294901760, %v338_v29  ;;  %v345_v40 = vand.u32 4294901760, %v344_v31  ;;  %257 = vmatpush.msra.mxu0 %v1284_v9  ;;  %v221_v47 = vsel %vm213_vm0, %v1338_v37, 0  ;;  %p1063_p4 = pnand %p1062_p1, %p1235_p5 }
  0x2e   : > { %v293_v39 = vsub.f32 %v1314_v23, %v292_v30  ;;  %v351_v44 = vand.u32 4294901760, %v350_v32  ;;  %v1357_v49 = vand.u32 4294901760, %v218_v45  ;;  %v357_v50 = vand.u32 4294901760, %v356_v33  ;;  %p1068_p13 = por %p1067_p12, %p1066_p10 }
  0x2f   : > { %406 = vmatpush.msrb.mxu2 %v336_v14  ;;  %v260_v42 = vand.u32 4294901760, %v1330_v34  ;;  %541 = vmatpush.msrb.mxu0 %v337_v22  ;;  %v301_v51 = vsub.f32 %v1319_v27, %v300_v41  ;;  %v1363_v52 = vsub.f32 %v233_v21, %v1332_v35  ;;  %v1365_v53 = vand.u32 4294901760, %v221_v47  ;;  %p1064_p8 = pneg %p1063_p4 }
  0x30   : > { %884 = vmatpush.msra.mxu3 %v339_v38  ;;  %v294_v43 = vand.u32 4294901760, %v293_v39  ;;  %340 = vmatpush.msra.mxu1 %v339_v38  ;;  %v267_v55 = vsub.f32 %v218_v45, %v1357_v49  ;;  %v236_v56 = vsel %vm213_vm0, %v1350_v46, 0  ;;  %v224_v63 = vsel %vm213_vm0, %v1371_v57, 0 }
  0x31   : > { %409 = vmatpush.msrb.mxu2 %v342_v16  ;;  %v261_v48 = vsub.f32 %v1330_v34, %v260_v42  ;;  %545 = vmatpush.msrb.mxu0 %v343_v24  ;;  %v275_v59 = vsub.f32 %v221_v47, %v1365_v53  ;;  %v302_v60 = vand.u32 4294901760, %v301_v51  ;;  %v308_v61 = vand.u32 4294901760, %v1363_v52  ;;  %p1069_p0 = pnand %p1068_p13, %p1064_p8 }
  0x32   : > { %295 = vmatmul.f32.vlgmr.msra.gmra.mxu2 %v294_v43  ;;  %885 = vmatpush.msra.mxu3 %v345_v40  ;;  %v268_v58 = vand.u32 4294901760, %v267_v55  ;;  %v1375_v62 = vand.u32 4294901760, %v236_v56  ;;  %v282_v6 = vand.u32 4294901760, %v224_v63 }
  0x33   : > { %346 = vmatpush.msra.mxu1 %v345_v40  ;;  %v262_v54 = vand.u32 4294901760, %v261_v48  ;;  %412 = vmatpush.msrb.mxu2 %v348_v17  ;;  %v276_v2 = vand.u32 4294901760, %v275_v59  ;;  %v309_v10 = vsub.f32 %v1363_v52, %v308_v61 }
  0x34   : > { %886 = vmatpush.msra.mxu3 %v351_v44  ;;  %549 = vmatpush.msrb.mxu0 %v349_v25  ;;  %v269_v0 = vsub.f32 %v267_v55, %v268_v58  ;;  %v315_v11 = vsub.f32 %v236_v56, %v1375_v62  ;;  %v283_v14 = vsub.f32 %v224_v63, %v282_v6 }
  0x35   : > { %352 = vmatpush.msra.mxu1 %v351_v44  ;;  %263 = vmatmul.f32.vlgmr.msra.gmra.mxu0 %v262_v54  ;;  %v310_v16 = vand.u32 4294901760, %v309_v10 }
  0x36   : > { %887 = vmatpush.msra.mxu3 %v357_v50  ;;  %415 = vmatpush.msrb.mxu2 %v1304_v18  ;;  %v270_v1 = vand.u32 4294901760, %v269_v0  ;;  %v316_v17 = vand.u32 4294901760, %v315_v11  ;;  %v284_v20 = vand.u32 4294901760, %v283_v14 }
  0x37   : > { %376 = vmatmul.f32.vlgmr.msra.gmra.mxu3 %v1298_v15  ;;  %358 = vmatpush.msra.mxu1 %v357_v50 }
  0x38   : > { %470 = vmatpush.msrb.mxu3 %v1272_v3  ;;  %360 = vmatmul.f32.vlgmr.msra.gmra.mxu1 %v1321_v28  ;;  %v285_v21 = vsub.f32 %v283_v14, %v284_v20 }
  0x39   : > { %600 = vmatpush.msrb.mxu1 %v1272_v3  ;;  %553 = vmatpush.msrb.mxu0 %v355_v26  ;;  %v277_v3 = vsub.f32 %v275_v59, %v276_v2 }
  0x3a   : > { %303 = vmatmul.f32.gmra.mxu2 %v302_v60  ;;  %472 = vmatpush.msrb.mxu3 %v1274_v4 }
  0x3b   : > { %602 = vmatpush.msrb.mxu1 %v1274_v4  ;;  %v278_v18 = vand.u32 4294901760, %v277_v3  ;;  %v317_v4 = vsub.f32 %v315_v11, %v316_v17 }
  0x3c   : > { %474 = vmatpush.msrb.mxu3 %v1276_v5 }
  0x3d   : > { %271 = vmatmul.f32.gmra.mxu0 %v270_v1  ;;  %604 = vmatpush.msrb.mxu1 %v1276_v5  ;;  %v318_v22 = vand.u32 4294901760, %v317_v4  ;;  %v286_v5 = vand.u32 4294901760, %v285_v21 }
  0x3e   : > { %476 = vmatpush.msrb.mxu3 %v1284_v9 }
  0x3f   : > { %380 = vmatmul.f32.gmra.mxu3 %v1306_v19  ;;  %606 = vmatpush.msrb.mxu1 %v1284_v9 }
  0x40   : > { %364 = vmatmul.f32.gmra.mxu1 %v1357_v49 }
  0x42   : > { %311 = vmatmul.f32.gmra.mxu2 %v310_v16 }
  0x45   : > { %279 = vmatmul.f32.gmra.mxu0 %v278_v18 }
  0x47   : > { %384 = vmatmul.f32.gmra.mxu3 %v1332_v35 }
  0x48   : > { %368 = vmatmul.f32.gmra.mxu1 %v1365_v53 }
  0x4a   : > { %319 = vmatmul.f32.gmra.mxu2 %v318_v22 }
  0x4d   : > { %287 = vmatmul.f32.gmra.mxu0 %v286_v5 }
  0x4f   : > { %388 = vmatmul.f32.gmra.mxu3 %v1375_v62 }
  0x50   : > { %372 = vmatmul.f32.gmra.mxu1 %v282_v6 }
  0x52   : > { %418 = vmatmul.f32.vlgmr.msrb.gmra.mxu2 %v1330_v34 }
  0x55   : > { %555 = vmatmul.f32.vlgmr.msrb.gmra.mxu0 %v1321_v28 }
  0x57   : > { %480 = vmatmul.f32.vlgmr.msrb.gmra.mxu3 %v260_v42 }
  0x58   : > { %608 = vmatmul.f32.vlgmr.msrb.gmra.mxu1 %v1321_v28 }
  0x5a   : > { %423 = vmatmul.f32.gmra.mxu2 %v267_v55 }
  0x5d   : > { %559 = vmatmul.f32.gmra.mxu0 %v1357_v49 }
  0x5f   : > { %486 = vmatmul.f32.gmra.mxu3 %v268_v58 }
  0x60   : > { %612 = vmatmul.f32.gmra.mxu1 %v1357_v49 }
  0x62   : > { %428 = vmatmul.f32.gmra.mxu2 %v275_v59 }
  0x65   : > { %563 = vmatmul.f32.gmra.mxu0 %v1365_v53 }
  0x67   : > { %492 = vmatmul.f32.gmra.mxu3 %v276_v2 }
  0x68   : > { %616 = vmatmul.f32.gmra.mxu1 %v1365_v53 }
  0x6a   : > { %433 = vmatmul.f32.gmra.mxu2 %v283_v14 }
  0x6d   : > { %567 = vmatmul.f32.gmra.mxu0 %v282_v6 }
  0x6f   : > { %498 = vmatmul.f32.gmra.mxu3 %v284_v20 }
  0x70   : > { %620 = vmatmul.f32.gmra.mxu1 %v282_v6 }
  0x72   : > { %438 = vmatmul.f32.gmra.mxu2 %v1314_v23 }
  0x75   : > { %571 = vmatmul.f32.gmra.mxu0 %v1298_v15 }
  0x77   : > { %504 = vmatmul.f32.gmra.mxu3 %v292_v30 }
  0x78   : > { %624 = vmatmul.f32.gmra.mxu1 %v1298_v15 }
  0x7a   : > { %443 = vmatmul.f32.gmra.mxu2 %v1319_v27 }
  0x7d   : > { %575 = vmatmul.f32.gmra.mxu0 %v1306_v19 }
  0x7f   : > { %510 = vmatmul.f32.gmra.mxu3 %v300_v41 }
  0x80   : > { %628 = vmatmul.f32.gmra.mxu1 %v1306_v19 }
  0x82   : > { %448 = vmatmul.f32.gmra.mxu2 %v1363_v52 }
  0x85   : > { %579 = vmatmul.f32.gmra.mxu0 %v1332_v35 }
  0x87   : > { %516 = vmatmul.f32.gmra.mxu3 %v308_v61 }
  0x88   : > { %632 = vmatmul.f32.gmra.mxu1 %v1332_v35 }
  0x8a   : > { %453 = vmatmul.f32.gmra.mxu2 %v315_v11 }
  0x8d   : > { %583 = vmatmul.f32.gmra.mxu0 %v1375_v62 }
  0x8f   : > { %522 = vmatmul.f32.gmra.mxu3 %v316_v17 }
  0x90   : > { %636 = vmatmul.f32.gmra.mxu1 %v1375_v62 }
  0xb2   : > { %v264_v9 = vpop.f32.mrf.mxu0 }
  0xb5   : > { %v296_v15 = vpop.f32.mrf.mxu2  ;;  %v361_v23 = vpop.f32.mrf.mxu1 }
  0xb6   : > { %v362_v24 = vadd.f32 %v361_v23, %v264_v9 }
  0xba   : > { %v377_v19 = vpop.f32.mrf.mxu3  ;;  %v272_v25 = vpop.f32.mrf.mxu0 }
  0xbb   : > { %v378_v26 = vadd.f32 %v377_v19, %v296_v15 }
  0xbd   : > { %v304_v27 = vpop.f32.mrf.mxu2  ;;  %v365_v28 = vpop.f32.mrf.mxu1 }
  0xbe   : > { %v366_v29 = vadd.f32 %v365_v28, %v272_v25 }
  0xc2   : > { %v381_v30 = vpop.f32.mrf.mxu3  ;;  %v280_v31 = vpop.f32.mrf.mxu0 }
  0xc3   : > { %v382_v32 = vadd.f32 %v381_v30, %v304_v27 }
  0xc5   : > { %v312_v33 = vpop.f32.mrf.mxu2  ;;  %v369_v34 = vpop.f32.mrf.mxu1 }
  0xc6   : > { %v370_v4 = vadd.f32 %v369_v34, %v280_v31 }
  0xca   : > { %v385_v35 = vpop.f32.mrf.mxu3  ;;  %v288_v38 = vpop.f32.mrf.mxu0 }
  0xcb   : > { %v386_v30 = vadd.f32 %v385_v35, %v312_v33 }
  0xcd   : > { %v1427_v39 = vpop.f32.mrf.mxu2  ;;  %v373_v40 = vpop.f32.mrf.mxu1 }
  0xd2   : > { %v1429_v41 = vpop.f32.mrf.mxu3  ;;  %v556_v42 = vpop.f32.mrf.mxu0 }
  0xd3   : > { %v390_v33 = vadd.f32 %v1429_v41, %v1427_v39 }
  0xd5   : > { %v419_v43 = vpop.f32.mrf.mxu2  ;;  %v609_v44 = vpop.f32.mrf.mxu1 }
  0xd6   : > { %v420_v60 = vadd.f32 %v419_v43, %v362_v24  ;;  %v374_v43 = vadd.f32 %v373_v40, %v288_v38 }
  0xda   : > { %v481_v45 = vpop.f32.mrf.mxu3  ;;  %v560_v47 = vpop.f32.mrf.mxu0 }
  0xdb   : > { %v482_v62 = vadd.f32 %v481_v45, %v420_v60 }
  0xdd   : > { %v424_v48 = vpop.f32.mrf.mxu2  ;;  %v613_v49 = vpop.f32.mrf.mxu1  ;;  %v557_v1 = vadd.f32 %v556_v42, %v482_v62 }
  0xde   : > { %v425_v10 = vadd.f32 %v424_v48, %v366_v29 }
  0xdf   : > { %v610_v3 = vadd.f32 %v609_v44, %v557_v1 }
  0xe1   : > { %v640_v22 = vsel %vm213_vm0, %v610_v3, -inf }
  0xe2   : > { %v487_v50 = vpop.f32.mrf.mxu3  ;;  %v564_v51 = vpop.f32.mrf.mxu0 }
  0xe3   : > { %v488_v14 = vadd.f32 %v487_v50, %v425_v10 }
  0xe5   : > { %v429_v52 = vpop.f32.mrf.mxu2  ;;  %v617_v53 = vpop.f32.mrf.mxu1  ;;  %v561_v5 = vadd.f32 %v560_v47, %v488_v14 }
  0xe6   : > { %v430_v19 = vadd.f32 %v429_v52, %v370_v4 }
  0xea   : > { %v493_v54 = vpop.f32.mrf.mxu3  ;;  %v568_v55 = vpop.f32.mrf.mxu0 }
  0xeb   : > { %v494_v27 = vadd.f32 %v493_v54, %v430_v19 }
  0xed   : > { %v434_v56 = vpop.f32.mrf.mxu2  ;;  %v621_v58 = vpop.f32.mrf.mxu1  ;;  %v565_v34 = vadd.f32 %v564_v51, %v494_v27 }
  0xee   : > { %v435_v60 = vadd.f32 %v434_v56, %v374_v43 }
  0xf2   : > { %v499_v59 = vpop.f32.mrf.mxu3  ;;  %v572_v61 = vpop.f32.mrf.mxu0 }
  0xf5   : > { %v439_v63 = vpop.f32.mrf.mxu2  ;;  %v625_v0 = vpop.f32.mrf.mxu1 }
  0xf6   : > { %v440_v2 = vadd.f32 %v439_v63, %v378_v26  ;;  %v614_v26 = vadd.f32 %v613_v49, %v561_v5  ;;  %v500_v49 = vadd.f32 %v499_v59, %v435_v60 }
  0xf8   : > { %v647_v31 = vsel %vm213_vm0, %v614_v26, -inf  ;;  %v569_v40 = vadd.f32 %v568_v55, %v500_v49 }
  0xfa   : > { %v505_v6 = vpop.f32.mrf.mxu3  ;;  %v576_v18 = vpop.f32.mrf.mxu0 }
  0xfb   : > { %v506_v11 = vadd.f32 %v505_v6, %v440_v2 }
  0xfd   : > { %v444_v16 = vpop.f32.mrf.mxu2  ;;  %v573_v17 = vadd.f32 %v572_v61, %v506_v11  ;;  %v629_v21 = vpop.f32.mrf.mxu1  ;;  %v618_v61 = vadd.f32 %v617_v53, %v565_v34  ;;  %v622_v53 = vadd.f32 %v621_v58, %v569_v40 }
  0xfe   : > { %v445_v9 = vadd.f32 %v444_v16, %v382_v32 }
  0xff   : > { %v626_v20 = vadd.f32 %v625_v0, %v573_v17  ;;  %v641_v38 = vsel %vm213_vm0, %v618_v61, -inf  ;;  %v648_v55 = vsel %vm213_vm0, %v622_v53, -inf }
 0x101   : > { %v642_v15 = vsel %vm213_vm0, %v626_v20, -inf }
 0x102   : > { %v643_v23 = vmax.f32 %v640_v22, %v642_v15  ;;  %v511_v24 = vpop.f32.mrf.mxu3  ;;  %v580_v44 = vpop.f32.mrf.mxu0 }
 0x103   : > { %v512_v25 = vadd.f32 %v511_v24, %v445_v9 }
 0x105   : > { %v449_v28 = vpop.f32.mrf.mxu2  ;;  %v577_v29 = vadd.f32 %v576_v18, %v512_v25  ;;  %v633_v50 = vpop.f32.mrf.mxu1 }
 0x106   : > { %v450_v45 = vadd.f32 %v449_v28, %v386_v30 }
 0x107   : > { %v630_v42 = vadd.f32 %v629_v21, %v577_v29 }
 0x109   : > { %v649_v32 = vsel %vm213_vm0, %v630_v42, -inf }
 0x10a   : > { %v650_v47 = vmax.f32 %v647_v31, %v649_v32  ;;  %v517_v48 = vpop.f32.mrf.mxu3  ;;  %v584_v2 = vpop.f32.mrf.mxu0 }
 0x10b   : > { %v518_v52 = vadd.f32 %v517_v48, %v450_v45 }
 0x10d   : > { %v581_v54 = vadd.f32 %v580_v44, %v518_v52  ;;  %v454_v62 = vpop.f32.mrf.mxu2  ;;  %v637_v10 = vpop.f32.mrf.mxu1 }
 0x10e   : > { %v455_v51 = vadd.f32 %v454_v62, %v390_v33 }
 0x10f   : > { %v634_v35 = vadd.f32 %v633_v50, %v581_v54 }
 0x111   : > { %v644_v63 = vsel %vm213_vm0, %v634_v35, -inf }
 0x112   : > { %v645_v0 = vmax.f32 %v641_v38, %v644_v63  ;;  %v523_v1 = vpop.f32.mrf.mxu3 }
 0x113   : > { %v524_v6 = vadd.f32 %v523_v1, %v455_v51 }
 0x114   : > { %v646_v56 = vmax.f32 %v643_v23, %v645_v0 }
 0x115   : > { %v585_v59 = vadd.f32 %v584_v2, %v524_v6 }
 0x116   : > { %v654_v11 = vsub.f32 %v610_v3, %v646_v56  ;;  %v656_v14 = vsub.f32 %v618_v61, %v646_v56  ;;  %v658_v16 = vsub.f32 %v626_v20, %v646_v56  ;;  %v660_v17 = vsub.f32 %v634_v35, %v646_v56 }
 0x117   : > { %v638_v39 = vadd.f32 %v637_v10, %v585_v59 }
 0x118   : > { %v662_v41 = vmul.f32 1.442695, %v654_v11  ;;  %v666_v18 = vmul.f32 1.442695, %v656_v14  ;;  %v670_v4 = vmul.f32 1.442695, %v658_v16 }
 0x119   : > { %v674_v21 = vmul.f32 1.442695, %v660_v17  ;;  %v651_v22 = vsel %vm213_vm0, %v638_v39, -inf }
 0x11a   : > { %965 = vpow2.f32 %v662_v41  ;;  %v652_v5 = vmax.f32 %v648_v55, %v651_v22 }
 0x11b   : > { %967 = vpow2.f32 %v666_v18 }
 0x11c   : > { %969 = vpow2.f32 %v670_v4  ;;  %v653_v9 = vmax.f32 %v650_v47, %v652_v5 }
 0x11d   : > { %971 = vpow2.f32 %v674_v21 }
 0x11e   : > { %v655_v58 = vsub.f32 %v614_v26, %v653_v9  ;;  %v657_v3 = vsub.f32 %v622_v53, %v653_v9  ;;  %v659_v15 = vsub.f32 %v630_v42, %v653_v9  ;;  %v661_v20 = vsub.f32 %v638_v39, %v653_v9 }
 0x120   : > { %v966_v23 = vpop.eup %965  ;;  %v664_v24 = vmul.f32 1.442695, %v655_v58  ;;  %v668_v19 = vmul.f32 1.442695, %v657_v3  ;;  %v672_v29 = vmul.f32 1.442695, %v659_v15 }
 0x121   : > { %v968_v25 = vpop.eup %967  ;;  %v678_v27 = vsel %vm213_vm0, %v966_v23, 0.0  ;;  %v692_v28 = vmul.f32 %v966_v23, %v1291_v12  ;;  %v676_v31 = vmul.f32 1.442695, %v661_v20 }
 0x122   : > { %v970_v30 = vpop.eup %969  ;;  %v679_v43 = vsel %vm213_vm0, %v968_v25, 0.0  ;;  %v694_v44 = vmul.f32 %v968_v25, %v1338_v37  ;;  %973 = vpow2.f32 %v664_v24 }
 0x123   : > { %v972_v26 = vpop.eup %971  ;;  %v680_v34 = vadd.f32 %v679_v43, %v678_v27  ;;  %v696_v42 = vmul.f32 %v970_v30, %v1279_v7  ;;  %v700_v45 = vsel %vm213_vm0, %v692_v28, 0.0  ;;  %v681_v32 = vsel %vm213_vm0, %v970_v30, 0.0 }
 0x124   : > { %v698_v47 = vmul.f32 %v972_v26, %v1294_v13  ;;  %v701_v12 = vsel %vm213_vm0, %v694_v44, 0.0  ;;  %975 = vpow2.f32 %v668_v19  ;;  %v683_v37 = vsel %vm213_vm0, %v972_v26, 0.0 }
 0x125   : > { %v682_v48 = vadd.f32 %v681_v32, %v680_v34  ;;  %v702_v50 = vadd.f32 %v701_v12, %v700_v45  ;;  %977 = vpow2.f32 %v672_v29  ;;  %v703_v60 = vsel %vm213_vm0, %v696_v42, 0.0 }
 0x126   : > { %979 = vpow2.f32 %v676_v31  ;;  %v705_v49 = vsel %vm213_vm0, %v698_v47, 0.0 }
 0x127   : > { %v684_v52 = vadd.f32 %v683_v37, %v682_v48  ;;  %v704_v61 = vadd.f32 %v703_v60, %v702_v50 }
 0x128   : > { %v974_v7 = vpop.eup %973 }
 0x129   : > { %v706_v54 = vadd.f32 %v705_v49, %v704_v61  ;;  %981 = vrcp.f32 %v684_v52  ;;  %v685_v13 = vsel %vm213_vm0, %v974_v7, 0.0  ;;  %v693_v33 = vmul.f32 %v974_v7, %v1335_v36 }
 0x12a   : > { %v976_v62 = vpop.eup %975  ;;  %v723_v18 = vand.u32 2147483647, %v684_v52  ;;  %vm719_vm2 = vweird.f32 %v684_v52 }
 0x12b   : > { %v978_v35 = vpop.eup %977  ;;  %v686_v38 = vsel %vm213_vm0, %v976_v62, 0.0  ;;  %v695_v40 = vmul.f32 %v976_v62, %v1371_v57  ;;  %v707_v6 = vsel %vm213_vm0, %v693_v33, 0.0 }
 0x12c   : > { %v980_v51 = vpop.eup %979  ;;  %v687_v63 = vadd.f32 %v686_v38, %v685_v13  ;;  %v697_v0 = vmul.f32 %v978_v35, %v1282_v8  ;;  %v688_v1 = vsel %vm213_vm0, %v978_v35, 0.0  ;;  %vm724_vm4 = vcmp.eq.f32.partialorder %v723_v18, 8.507059e+37 }
 0x12d   : > { %v699_v2 = vmul.f32 %v980_v51, %v1350_v46  ;;  %v708_v56 = vsel %vm213_vm0, %v695_v40, 0.0  ;;  %v690_v59 = vsel %vm213_vm0, %v980_v51, 0.0  ;;  %v725_v46 = vand.u32 2147483648, %v684_v52 }
 0x12e   : > { %v689_v10 = vadd.f32 %v688_v1, %v687_v63  ;;  %v709_v53 = vadd.f32 %v708_v56, %v707_v6  ;;  %v710_v57 = vsel %vm213_vm0, %v697_v0, 0.0 }
 0x12f   : > { %v982_v36 = vpop.eup %981  ;;  %v712_v8 = vsel %vm213_vm0, %v699_v2, 0.0  ;;  %v726_v55 = vor.u32 1.1754944e-38, %v725_v46 }
 0x130   : > { %v715_v11 = vmul.f32 %v982_v36, %v684_v52  ;;  %v691_v14 = vadd.f32 %v690_v59, %v689_v10  ;;  %v711_v16 = vadd.f32 %v710_v57, %v709_v53  ;;  %vm720_vm1 = vweird.f32 %v982_v36 }
 0x131   : > { %vm721_vm3 = vmor %vm719_vm2, %vm720_vm1 }
 0x132   : > { %v716_v17 = vsub.f32 1.0, %v715_v11  ;;  %v713_v39 = vadd.f32 %v712_v8, %v711_v16  ;;  %983 = vrcp.f32 %v691_v14  ;;  %v740_v15 = vand.u32 2147483648, %v691_v14 }
 0x133   : > { %v738_v23 = vand.u32 2147483647, %v691_v14  ;;  %vm734_vm6 = vweird.f32 %v691_v14 }
 0x134   : > { %v717_v41 = vmul.f32 %v982_v36, %v716_v17  ;;  %v741_v19 = vor.u32 1.1754944e-38, %v740_v15 }
 0x135   : > { %vm739_vm8 = vcmp.eq.f32.partialorder %v738_v23, 8.507059e+37 }
 0x136   : > { %v718_v4 = vadd.f32 %v982_v36, %v717_v41 }
 0x138   : > { %v984_v21 = vpop.eup %983  ;;  %v722_v22 = vsel %vm721_vm3, %v982_v36, %v718_v4 }
 0x139   : > { %v727_v5 = vsel %vm724_vm4, %v726_v55, %v722_v22  ;;  %v730_v9 = vmul.f32 %v984_v21, %v691_v14  ;;  %vm735_vm5 = vweird.f32 %v984_v21 }
 0x13a   : > { %v728_v58 = vmul.f32 %v727_v5, %v706_v54  ;;  %vm736_vm7 = vmor %vm734_vm6, %vm735_vm5 }
 0x13b   : > { %v731_v3 = vsub.f32 1.0, %v730_v9 }
 0x13c   : > { %744 = vst.msk [vmem:[%s198_s24] sm:$0xff] %vm213_vm0, %v728_v58 }
 0x13d   : > { %v732_v20 = vmul.f32 %v984_v21, %v731_v3 }
 0x13f   : > { %v733_v24 = vadd.f32 %v984_v21, %v732_v20 }
 0x141   : > { %v737_v25 = vsel %vm736_vm7, %v984_v21, %v733_v24 }
 0x142   : > { %v742_v27 = vsel %vm739_vm8, %v741_v19, %v737_v25 }
 0x143   : > { %v743_v28 = vmul.f32 %v742_v27, %v713_v39 }
 0x145   : > { %745 = vst.msk [vmem:[%s198_s24 + $0x8] sm:$0xff] %vm213_vm0, %v743_v28 }
 0x146   : > { %1072 = shalt.err (!%p1069_p0)
}
 0x147   : > { %s1136_s30 = smov 128   ;;  %s1137_s7 = smov 8  }
 0x148   : > { %894 = dma.vmem_to_hbm [thread:$0]  (%p1235_p5), %s762_s6, 256, %s764_s16, %s747_s12, %s1136_s30, %s1136_s30, %s1137_s7  }
 0x149 PF: > { %s778_s15 = sand.u32 1, %s1111_s9   ;;  %p905_p3 = pnand %p865_p11, %p1202_p6 }
 0x14a   : > { %s779_s17 = scalar_lea.sflag [#allocation4], %s778_s15 }
 0x14b   : > { %p906_p7 = pneg %p905_p3 }
 0x14d   : > { %1106 = dma.done.wait (%p906_p7), %s779_s17, 256  }
 0x14e   : > { %1108 = vsyncadd (%p906_p7), %s779_s17, 4294967040  ;;  %s19_s14 = sadd.s32 1, %s1131_s14   ;;  %s1516_s9 = smov %s1115_s10 }
 0x14f   : > { %p16_p9 = scmp.ge.s32.totalorder %s19_s14, 4   ;;  %s1517_s10 = smov %s1119_s11 }
 0x150   : > { %s1518_s11 = smov %s1244_s8  ;;  %s1519_s12 = smov %s1127_s13 }
 0x151   : > { %s1520_s13 = smov %s1522_s29  ;;  %18 = sbr.rel (!%p16_p9) target bundleno = 7 (0x7), region = 77 }
 0x156   :  { %785 = vsyncpa [#allocation3], 1 }
 0x157   :  { %787 = vsyncpa [#allocation3 + $0x1], 1 }
 0x158   :  { %788 = vsyncpa [#allocation6], 1 }
 0x159   :  { %789 = vsyncpa [#allocation4], 1 }
 0x15a   :  { %791 = vsyncpa [#allocation4 + $0x1], 1 }

</bundles_post_ra>
